<compile_context>
chip_gen: v6e
topology: v6e:2x2x1
jax: 0.10.0
libtpu: 0.0.40
codegen_flags: <defaults>
</compile_context>

<pallas_src>
import functools

import jax
import jax.numpy as jnp
from jax.experimental import pallas as pl
from jax.experimental.pallas import tpu as pltpu

MM_DTYPE = jnp.bfloat16
LANE = 128
SUBLANE = 8


def _round_up(n, m):
    return ((n + m - 1) // m) * m


@functools.lru_cache(maxsize=None)
def _vmem_budget_bytes():
    """~75% of per-core VMEM (v5e/v6e: ~96 of 128 MiB, v7x: ~48 of 64 MiB).

    The 25% headroom covers the f32 intermediate, pipeline bookkeeping and
    compiler-internal scratch.
    """
    cap = 128 * 1024 * 1024
    try:
        info = pltpu.get_tpu_info()
        cap = int(getattr(info, "vmem_capacity_bytes", cap)) or cap
    except Exception:
        pass
    return (cap * 3) // 4


def _const_spec(shape, index_map, single_buffer):
    """BlockSpec whose block index is the same for every grid step.

    With single_buffer=True, request 1-deep buffering (pl.Buffered(1)) so the
    resident weights aren't pointlessly double-buffered.  Falls back to the
    default spec if this JAX version rejects pipeline_mode at construction.
    """
    if single_buffer:
        try:
            return pl.BlockSpec(shape, index_map, pipeline_mode=pl.Buffered(1))
        except TypeError:
            pass
    return pl.BlockSpec(shape, index_map)


# --------------------------------------------------------------------------- #
# Kernels
# --------------------------------------------------------------------------- #
def _chained_kernel_resident(x_ref, wa_ref, ba_ref, wb_ref, bb_ref, o_ref):
    """Whole weights VMEM-resident; one batch tile per grid step."""
    x = x_ref[...].astype(MM_DTYPE)                     # in-kernel cast (VPU)
    h = jnp.dot(x, wa_ref[...], preferred_element_type=jnp.float32)
    h = h + ba_ref[...]                                 # (1, D_HID) broadcasts
    y = jnp.dot(h.astype(MM_DTYPE), wb_ref[...],
                preferred_element_type=jnp.float32)
    o_ref[...] = jnp.maximum(y + bb_ref[...], 0.0).astype(o_ref.dtype)


def _chained_kernel_tiled(x_ref, wa_ref, ba_ref, wb_ref, bb_ref, o_ref, acc_ref):
    """Hidden dimension tiled (reduction axis), f32 accumulator scratch."""
    j = pl.program_id(1)

    @pl.when(j == 0)
    def _():
        acc_ref[...] = jnp.zeros_like(acc_ref)

    x = x_ref[...].astype(MM_DTYPE)
    h = jnp.dot(x, wa_ref[...], preferred_element_type=jnp.float32)
    h = h + ba_ref[...]                                 # bias slice for this hid tile
    acc_ref[...] += jnp.dot(h.astype(MM_DTYPE), wb_ref[...],
                            preferred_element_type=jnp.float32)

    @pl.when(j == pl.num_programs(1) - 1)
    def _():
        o_ref[...] = jnp.maximum(acc_ref[...] + bb_ref[...], 0.0).astype(o_ref.dtype)


# --------------------------------------------------------------------------- #
# Wrappers
# --------------------------------------------------------------------------- #
def prepare_params(wa, ba, wb, bb):
    """Pad (lane-dense multiples of 128) and cast the parameters ONCE.

    wa: (D_IN, D_HID), ba: (D_HID,), wb: (D_HID, D_OUT), bb: (D_OUT,)
    (weights stored (in_features, out_features), i.e. transposed vs. PyTorch).
    Zero padding is mathematically inert for this forward pass.
    """
    d_in, d_hid = wa.shape
    d_out = wb.shape[1]
    d_in_p, d_hid_p, d_out_p = (_round_up(d, LANE) for d in (d_in, d_hid, d_out))
    wap = jnp.zeros((d_in_p, d_hid_p), MM_DTYPE).at[:d_in, :d_hid].set(wa.astype(MM_DTYPE))
    wbp = jnp.zeros((d_hid_p, d_out_p), MM_DTYPE).at[:d_hid, :d_out].set(wb.astype(MM_DTYPE))
    bap = jnp.zeros((1, d_hid_p), jnp.float32).at[0, :d_hid].set(ba.astype(jnp.float32))
    bbp = jnp.zeros((1, d_out_p), jnp.float32).at[0, :d_out].set(bb.astype(jnp.float32))
    return (wap, bap, wbp, bbp)


@functools.partial(
    jax.jit,
    static_argnames=("d_out", "block_b", "out_dtype", "force_tiled",
                     "hidden_tile", "single_buffer_weights"))
def _chained_forward_impl(x, wap, bap, wbp, bbp, *, d_out, block_b, out_dtype,
                          force_tiled, hidden_tile, single_buffer_weights):
    B, d_in = x.shape
    d_in_p, d_hid_p = wap.shape
    d_out_p = wbp.shape[1]
    out_dt = jnp.dtype(out_dtype)

    budget = _vmem_budget_bytes()
    x_item = jnp.dtype(x.dtype).itemsize
    o_item = out_dt.itemsize

    # VMEM footprint of fully-resident weights (single- vs double-buffered).
    w_mult = 1 if single_buffer_weights else 2
    resident_w = w_mult * ((d_in_p * d_hid_p + d_hid_p * d_out_p) * 2
                           + (d_hid_p + d_out_p) * 4)
    use_resident = (not force_tiled) and resident_w <= budget // 2

    # Batch tile: as large as block_b / VMEM allow, but aim for >=2 tiles so the
    # "parallel" batch axis can feed both v7x TensorCores.
    b8 = _round_up(B, SUBLANE)
    tb = max(SUBLANE, min(block_b, _round_up((b8 + 1) // 2, SUBLANE)))

    if use_resident:
        def est(tb_):
            return (resident_w
                    + 2 * tb_ * d_in_p * x_item        # x double buffer
                    + 2 * tb_ * d_out_p * o_item       # out double buffer
                    + tb_ * d_hid_p * (4 + 2)          # f32 h + bf16 recast
                    + tb_ * d_in_p * 2)                # bf16 x cast
        while tb > SUBLANE and est(tb) > budget:
            tb = max(SUBLANE, _round_up(tb // 2, SUBLANE))
    else:
        def w_blk_bytes(th_):
            # Wa/ba/Wb tiles change with j -> double-buffered; bb stays resident.
            return (2 * (d_in_p * th_ + th_ * d_out_p) * 2
                    + 2 * th_ * 4 + d_out_p * 4)
        if hidden_tile is not None:
            assert hidden_tile % LANE == 0 and d_hid_p % hidden_tile == 0, (
                "hidden_tile must be a multiple of 128 dividing the padded hidden dim")
            th = hidden_tile
        else:
            divisors = [t for t in range(LANE, d_hid_p + 1, LANE) if d_hid_p % t == 0]
            th = divisors[0]
            for t in reversed(divisors):
                if w_blk_bytes(t) <= budget // 2:
                    th = t
                    break

        def est(tb_):
            return (w_blk_bytes(th)
                    + 2 * tb_ * d_in_p * x_item
                    + 2 * tb_ * d_out_p * o_item
                    + tb_ * d_out_p * 4                # f32 accumulator scratch
                    + tb_ * th * (4 + 2)               # f32 h tile + bf16 recast
                    + tb_ * d_in_p * 2)
        while tb > SUBLANE and est(tb) > budget:
            tb = max(SUBLANE, _round_up(tb // 2, SUBLANE))

    b_p = _round_up(B, tb)
    if b_p == B and d_in_p == d_in:
        xp = x                                          # no padding pass needed
    else:
        xp = jnp.zeros((b_p, d_in_p), x.dtype).at[:B, :d_in].set(x)

    flops = 2 * b_p * (d_in_p * d_hid_p + d_hid_p * d_out_p)

    if use_resident:
        grid = (b_p // tb,)
        bytes_accessed = (xp.size * x_item + wap.size * 2 + wbp.size * 2
                          + bap.size * 4 + bbp.size * 4 + b_p * d_out_p * o_item)
        out_p = pl.pallas_call(
            _chained_kernel_resident,
            out_shape=jax.ShapeDtypeStruct((b_p, d_out_p), out_dt),
            grid=grid,
            in_specs=[
                pl.BlockSpec((tb, d_in_p), lambda i: (i, 0)),                       # x: streamed
                _const_spec((d_in_p, d_hid_p), lambda i: (0, 0), single_buffer_weights),  # Wa
                _const_spec((1, d_hid_p), lambda i: (0, 0), single_buffer_weights),       # ba
                _const_spec((d_hid_p, d_out_p), lambda i: (0, 0), single_buffer_weights), # Wb
                _const_spec((1, d_out_p), lambda i: (0, 0), single_buffer_weights),       # bb
            ],
            out_specs=pl.BlockSpec((tb, d_out_p), lambda i: (i, 0)),
            compiler_params=pltpu.CompilerParams(
                dimension_semantics=("parallel",),
                vmem_limit_bytes=int(budget)),
            cost_estimate=pl.CostEstimate(flops=flops, transcendentals=0,
                                          bytes_accessed=int(bytes_accessed)),
        )(xp, wap, bap, wbp, bbp)
    else:
        nh = d_hid_p // th
        grid = (b_p // tb, nh)
        bytes_accessed = (xp.size * x_item + wap.size * 2 + wbp.size * 2
                          + bap.size * 4 + bbp.size * 4 + b_p * d_out_p * o_item)
        out_p = pl.pallas_call(
            _chained_kernel_tiled,
            out_shape=jax.ShapeDtypeStruct((b_p, d_out_p), out_dt),
            grid=grid,
            in_specs=[
                pl.BlockSpec((tb, d_in_p), lambda i, j: (i, 0)),                    # x
                pl.BlockSpec((d_in_p, th), lambda i, j: (0, j)),                    # Wa tile
                pl.BlockSpec((1, th), lambda i, j: (0, j)),                         # ba tile
                pl.BlockSpec((th, d_out_p), lambda i, j: (j, 0)),                   # Wb tile
                _const_spec((1, d_out_p), lambda i, j: (0, 0), single_buffer_weights),  # bb
            ],
            out_specs=pl.BlockSpec((tb, d_out_p), lambda i, j: (i, 0)),
            scratch_shapes=[pltpu.VMEM((tb, d_out_p), jnp.float32)],
            compiler_params=pltpu.CompilerParams(
                dimension_semantics=("parallel", "arbitrary"),
                vmem_limit_bytes=int(budget)),
            cost_estimate=pl.CostEstimate(flops=flops, transcendentals=0,
                                          bytes_accessed=int(bytes_accessed)),
        )(xp, wap, bap, wbp, bbp)

    return out_p[:B, :d_out]


def chained_forward(x, params, *, d_out, block_b=512, out_dtype=None,
                    force_tiled=False, hidden_tile=None):
    """forward(x) = relu((x @ Wa + ba) @ Wb + bb) using pre-padded `params`.

    params: output of prepare_params().  out_dtype defaults to x.dtype; pass
    jnp.bfloat16 to halve output writeback bytes if the consumer tolerates it.
    """
    wap, bap, wbp, bbp = params
    assert x.ndim == 2 and x.shape[1] <= wap.shape[0]
    out_name = jnp.dtype(out_dtype if out_dtype is not None else x.dtype).name
    common = dict(d_out=int(d_out), block_b=int(block_b), out_dtype=out_name,
                  force_tiled=bool(force_tiled), hidden_tile=hidden_tile)
    try:
        return _chained_forward_impl(x, wap, bap, wbp, bbp,
                                     single_buffer_weights=True, **common)
    except Exception:
        # Safety net: retry with default (double-buffered) weight specs in case
        # this JAX build rejects pl.Buffered(1) during lowering.
        return _chained_forward_impl(x, wap, bap, wbp, bbp,
                                     single_buffer_weights=False, **common)


if __name__ == "__main__":
    # Small shapes consistent with the Linear -> Linear -> ReLU chain.
    B, D_IN, D_HID, D_OUT = 16, 32, 256, 40

    key = jax.random.PRNGKey(0)
    kx, kwa, kba, kwb, kbb = jax.random.split(key, 5)

    x = jax.random.normal(kx, (B, D_IN), dtype=jnp.float32)

    # Deterministic parameter init (PyTorch-Linear-style uniform bounds).
    bound_a = 1.0 / (D_IN ** 0.5)
    wa = jax.random.uniform(kwa, (D_IN, D_HID), jnp.float32, -bound_a, bound_a)
    ba = jax.random.uniform(kba, (D_HID,), jnp.float32, -bound_a, bound_a)
    bound_b = 1.0 / (D_HID ** 0.5)
    wb = jax.random.uniform(kwb, (D_HID, D_OUT), jnp.float32, -bound_b, bound_b)
    bb = jax.random.uniform(kbb, (D_OUT,), jnp.float32, -bound_b, bound_b)

    # Pad / cast the parameters once, outside the per-call path.
    params = prepare_params(wa, ba, wb, bb)

    out = jax.block_until_ready(chained_forward(x, params, d_out=D_OUT))
    assert out.shape == (B, D_OUT)

    # Reference 1: same bf16-input / f32-accumulate math as the kernel.
    h_ref = jnp.dot(x.astype(jnp.bfloat16), wa.astype(jnp.bfloat16),
                    preferred_element_type=jnp.float32) + ba
    y_ref = jnp.dot(h_ref.astype(jnp.bfloat16), wb.astype(jnp.bfloat16),
                    preferred_element_type=jnp.float32) + bb
    ref_bf16 = jnp.maximum(y_ref, 0.0)
    assert jnp.allclose(out, ref_bf16, atol=2e-3, rtol=2e-3)

    # Reference 2: full-f32 forward semantics of the PyTorch module
    # (loose tolerance for the intentional bf16 MXU inputs).
    ref_f32 = jnp.maximum((x @ wa + ba) @ wb + bb, 0.0)
    assert jnp.allclose(out, ref_f32, atol=1e-1, rtol=1e-1)

    # Exercise the reduction-tiled fallback path (used when the weights would
    # not fit in ~half the per-generation VMEM budget).
    out_tiled = jax.block_until_ready(
        chained_forward(x, params, d_out=D_OUT, force_tiled=True, hidden_tile=128))
    assert out_tiled.shape == (B, D_OUT)
    assert jnp.allclose(out_tiled, ref_bf16, atol=2e-3, rtol=2e-3)

    print("KERNEL_OK")
</pallas_src>

<mosaic_0001>
module attributes {stable_mosaic.version = 11 : i64} {
  func.func @_chained_kernel_resident(%arg0: i32, %arg1: memref<8x128xf32, #tpu.memory_space<vmem>>, %arg2: memref<128x256xbf16, #tpu.memory_space<vmem>>, %arg3: memref<1x256xf32, #tpu.memory_space<vmem>>, %arg4: memref<256x128xbf16, #tpu.memory_space<vmem>>, %arg5: memref<1x128xf32, #tpu.memory_space<vmem>>, %arg6: memref<8x128xf32, #tpu.memory_space<vmem>>) attributes {dimension_semantics = [#tpu.dimension_semantics<parallel>], iteration_bounds = array<i64: 2>, scalar_prefetch = 0 : i64, scratch_operands = 0 : i64, tpu.core_type = #tpu.core_type<tc>, window_params = [{transform_indices = @transform_0, window_bounds = array<i64: 8, 128>}, {pipeline_mode = #tpu.pipeline_mode<synchronous>, transform_indices = @transform_1, window_bounds = array<i64: 128, 256>}, {pipeline_mode = #tpu.pipeline_mode<synchronous>, transform_indices = @transform_2, window_bounds = array<i64: 1, 256>}, {pipeline_mode = #tpu.pipeline_mode<synchronous>, transform_indices = @transform_3, window_bounds = array<i64: 256, 128>}, {pipeline_mode = #tpu.pipeline_mode<synchronous>, transform_indices = @transform_4, window_bounds = array<i64: 1, 128>}, {transform_indices = @transform_5, window_bounds = array<i64: 8, 128>}]} {
    %c0 = arith.constant 0 : index
    %c0_0 = arith.constant 0 : index
    %0 = vector.load %arg1[%c0, %c0_0] : memref<8x128xf32, #tpu.memory_space<vmem>>, vector<8x128xf32>
    %1 = arith.truncf %0 : vector<8x128xf32> to vector<8x128xbf16>
    %c0_1 = arith.constant 0 : index
    %c0_2 = arith.constant 0 : index
    %2 = vector.load %arg2[%c0_1, %c0_2] : memref<128x256xbf16, #tpu.memory_space<vmem>>, vector<128x256xbf16>
    %cst = arith.constant dense<0.000000e+00> : vector<8x256xf32>
    %3 = tpu.matmul %1, %2, %cst {dimension_numbers = #tpu.dot_dimension_numbers<[1], [0], [0], [1], [0, 0, 1, 1], [], []>} : vector<8x128xbf16>, vector<128x256xbf16>, vector<8x256xf32> -> vector<8x256xf32>
    %c0_3 = arith.constant 0 : index
    %c0_4 = arith.constant 0 : index
    %4 = vector.load %arg3[%c0_3, %c0_4] : memref<1x256xf32, #tpu.memory_space<vmem>>, vector<1x256xf32>
    %5 = vector.broadcast %4 : vector<1x256xf32> to vector<8x256xf32>
    %6 = arith.addf %3, %5 : vector<8x256xf32>
    %7 = arith.truncf %6 : vector<8x256xf32> to vector<8x256xbf16>
    %c0_5 = arith.constant 0 : index
    %c0_6 = arith.constant 0 : index
    %8 = vector.load %arg4[%c0_5, %c0_6] : memref<256x128xbf16, #tpu.memory_space<vmem>>, vector<256x128xbf16>
    %cst_7 = arith.constant dense<0.000000e+00> : vector<8x128xf32>
    %9 = tpu.matmul %7, %8, %cst_7 {dimension_numbers = #tpu.dot_dimension_numbers<[1], [0], [0], [1], [0, 0, 1, 1], [], []>} : vector<8x256xbf16>, vector<256x128xbf16>, vector<8x128xf32> -> vector<8x128xf32>
    %c0_8 = arith.constant 0 : index
    %c0_9 = arith.constant 0 : index
    %10 = vector.load %arg5[%c0_8, %c0_9] : memref<1x128xf32, #tpu.memory_space<vmem>>, vector<1x128xf32>
    %11 = vector.broadcast %10 : vector<1x128xf32> to vector<8x128xf32>
    %12 = arith.addf %9, %11 : vector<8x128xf32>
    %cst_10 = arith.constant 0.000000e+00 : f32
    %13 = vector.broadcast %cst_10 : f32 to vector<8x128xf32>
    %14 = arith.maximumf %12, %13 : vector<8x128xf32>
    %c0_11 = arith.constant 0 : index
    %c0_12 = arith.constant 0 : index
    %15 = vector.load %arg6[%c0_11, %c0_12] : memref<8x128xf32, #tpu.memory_space<vmem>>, vector<8x128xf32>
    tpu.vector_store %arg6[%c0_11, %c0_12], %14 {strides = array<i32>} : memref<8x128xf32, #tpu.memory_space<vmem>>, vector<8x128xf32>,
    return
  }
  func.func @transform_0(%arg0: i32) -> (i32, i32) {
    %c0_i32 = arith.constant 0 : i32
    %c0_i32_0 = arith.constant 0 : i32
    return %arg0, %c0_i32 : i32, i32
  }
  func.func @transform_1(%arg0: i32) -> (i32, i32) {
    %c0_i32 = arith.constant 0 : i32
    %c0_i32_0 = arith.constant 0 : i32
    %c0_i32_1 = arith.constant 0 : i32
    return %c0_i32, %c0_i32_0 : i32, i32
  }
  func.func @transform_2(%arg0: i32) -> (i32, i32) {
    %c0_i32 = arith.constant 0 : i32
    %c0_i32_0 = arith.constant 0 : i32
    %c0_i32_1 = arith.constant 0 : i32
    return %c0_i32, %c0_i32_0 : i32, i32
  }
  func.func @transform_3(%arg0: i32) -> (i32, i32) {
    %c0_i32 = arith.constant 0 : i32
    %c0_i32_0 = arith.constant 0 : i32
    %c0_i32_1 = arith.constant 0 : i32
    return %c0_i32, %c0_i32_0 : i32, i32
  }
  func.func @transform_4(%arg0: i32) -> (i32, i32) {
    %c0_i32 = arith.constant 0 : i32
    %c0_i32_0 = arith.constant 0 : i32
    %c0_i32_1 = arith.constant 0 : i32
    return %c0_i32, %c0_i32_0 : i32, i32
  }
  func.func @transform_5(%arg0: i32) -> (i32, i32) {
    %c0_i32 = arith.constant 0 : i32
    %c0_i32_0 = arith.constant 0 : i32
    return %arg0, %c0_i32 : i32, i32
  }
}

module attributes {stable_mosaic.version = 11 : i64} {
  func.func @_chained_kernel_resident(%arg0: i32, %arg1: memref<8x128xf32, #tpu.memory_space<vmem>>, %arg2: memref<128x256xbf16, #tpu.memory_space<vmem>>, %arg3: memref<1x256xf32, #tpu.memory_space<vmem>>, %arg4: memref<256x128xbf16, #tpu.memory_space<vmem>>, %arg5: memref<1x128xf32, #tpu.memory_space<vmem>>, %arg6: memref<8x128xf32, #tpu.memory_space<vmem>>) attributes {dimension_semantics = [#tpu.dimension_semantics<parallel>], iteration_bounds = array<i64: 2>, scalar_prefetch = 0 : i64, scratch_operands = 0 : i64, tpu.core_type = #tpu.core_type<tc>, window_params = [{transform_indices = @transform_0, window_bounds = array<i64: 8, 128>}, {pipeline_mode = #tpu.pipeline_mode<synchronous>, transform_indices = @transform_1, window_bounds = array<i64: 128, 256>}, {pipeline_mode = #tpu.pipeline_mode<synchronous>, transform_indices = @transform_2, window_bounds = array<i64: 1, 256>}, {pipeline_mode = #tpu.pipeline_mode<synchronous>, transform_indices = @transform_3, window_bounds = array<i64: 256, 128>}, {pipeline_mode = #tpu.pipeline_mode<synchronous>, transform_indices = @transform_4, window_bounds = array<i64: 1, 128>}, {transform_indices = @transform_5, window_bounds = array<i64: 8, 128>}]} {
    %c0 = arith.constant 0 : index
    %c0_0 = arith.constant 0 : index
    %0 = vector.load %arg1[%c0, %c0_0] : memref<8x128xf32, #tpu.memory_space<vmem>>, vector<8x128xf32>
    %1 = arith.truncf %0 : vector<8x128xf32> to vector<8x128xbf16>
    %c0_1 = arith.constant 0 : index
    %c0_2 = arith.constant 0 : index
    %2 = vector.load %arg2[%c0_1, %c0_2] : memref<128x256xbf16, #tpu.memory_space<vmem>>, vector<128x256xbf16>
    %cst = arith.constant dense<0.000000e+00> : vector<8x256xf32>
    %3 = tpu.matmul %1, %2, %cst {dimension_numbers = #tpu.dot_dimension_numbers<[1], [0], [0], [1], [0, 0, 1, 1], [], []>} : vector<8x128xbf16>, vector<128x256xbf16>, vector<8x256xf32> -> vector<8x256xf32>
    %c0_3 = arith.constant 0 : index
    %c0_4 = arith.constant 0 : index
    %4 = vector.load %arg3[%c0_3, %c0_4] : memref<1x256xf32, #tpu.memory_space<vmem>>, vector<1x256xf32>
    %5 = vector.broadcast %4 : vector<1x256xf32> to vector<8x256xf32>
    %6 = arith.addf %3, %5 : vector<8x256xf32>
    %7 = arith.truncf %6 : vector<8x256xf32> to vector<8x256xbf16>
    %c0_5 = arith.constant 0 : index
    %c0_6 = arith.constant 0 : index
    %8 = vector.load %arg4[%c0_5, %c0_6] : memref<256x128xbf16, #tpu.memory_space<vmem>>, vector<256x128xbf16>
    %cst_7 = arith.constant dense<0.000000e+00> : vector<8x128xf32>
    %9 = tpu.matmul %7, %8, %cst_7 {dimension_numbers = #tpu.dot_dimension_numbers<[1], [0], [0], [1], [0, 0, 1, 1], [], []>} : vector<8x256xbf16>, vector<256x128xbf16>, vector<8x128xf32> -> vector<8x128xf32>
    %c0_8 = arith.constant 0 : index
    %c0_9 = arith.constant 0 : index
    %10 = vector.load %arg5[%c0_8, %c0_9] : memref<1x128xf32, #tpu.memory_space<vmem>>, vector<1x128xf32>
    %11 = vector.broadcast %10 : vector<1x128xf32> to vector<8x128xf32>
    %12 = arith.addf %9, %11 : vector<8x128xf32>
    %cst_10 = arith.constant 0.000000e+00 : f32
    %13 = vector.broadcast %cst_10 : f32 to vector<8x128xf32>
    %14 = arith.maximumf %12, %13 : vector<8x128xf32>
    %c0_11 = arith.constant 0 : index
    %c0_12 = arith.constant 0 : index
    %15 = vector.load %arg6[%c0_11, %c0_12] : memref<8x128xf32, #tpu.memory_space<vmem>>, vector<8x128xf32>
    tpu.vector_store %arg6[%c0_11, %c0_12], %14 {strides = array<i32>} : memref<8x128xf32, #tpu.memory_space<vmem>>, vector<8x128xf32>,
    return
  }
  func.func @transform_0(%arg0: i32) -> (i32, i32) {
    %c0_i32 = arith.constant 0 : i32
    %c0_i32_0 = arith.constant 0 : i32
    return %arg0, %c0_i32 : i32, i32
  }
  func.func @transform_1(%arg0: i32) -> (i32, i32) {
    %c0_i32 = arith.constant 0 : i32
    %c0_i32_0 = arith.constant 0 : i32
    %c0_i32_1 = arith.constant 0 : i32
    return %c0_i32, %c0_i32_0 : i32, i32
  }
  func.func @transform_2(%arg0: i32) -> (i32, i32) {
    %c0_i32 = arith.constant 0 : i32
    %c0_i32_0 = arith.constant 0 : i32
    %c0_i32_1 = arith.constant 0 : i32
    return %c0_i32, %c0_i32_0 : i32, i32
  }
  func.func @transform_3(%arg0: i32) -> (i32, i32) {
    %c0_i32 = arith.constant 0 : i32
    %c0_i32_0 = arith.constant 0 : i32
    %c0_i32_1 = arith.constant 0 : i32
    return %c0_i32, %c0_i32_0 : i32, i32
  }
  func.func @transform_4(%arg0: i32) -> (i32, i32) {
    %c0_i32 = arith.constant 0 : i32
    %c0_i32_0 = arith.constant 0 : i32
    %c0_i32_1 = arith.constant 0 : i32
    return %c0_i32, %c0_i32_0 : i32, i32
  }
  func.func @transform_5(%arg0: i32) -> (i32, i32) {
    %c0_i32 = arith.constant 0 : i32
    %c0_i32_0 = arith.constant 0 : i32
    return %arg0, %c0_i32 : i32, i32
  }
}

</mosaic_0001>

<bundles_post_ra>
// kernel: _chained_forward_impl.1
= control target key start
LH: loop header
LB: loop body
LE: loop exit
PB: predicated region body
PF: predicated region fallthrough
CT: control target
= control target key end

     0   :  { %10 = vsyncpa [#allocation3], 0  ;;  %s1144_s0 = inlined_call_operand.vmem [shape: f32[16,128], index: 0, kind: input, shape index: {}]   ;;  %s1145_s1 = inlined_call_operand.hbm [shape: bf16[128,256], index: 1, kind: input, shape index: {}]   ;;  %s1146_s2 = inlined_call_operand.vmem [shape: f32[1,256], index: 2, kind: input, shape index: {}]   ;;  %s1147_s3 = inlined_call_operand.hbm [shape: bf16[256,128], index: 3, kind: input, shape index: {}]   ;;  %s1148_s4 = inlined_call_operand.vmem [shape: f32[1,128], index: 4, kind: input, shape index: {}]   ;;  %s1149_s5 = inlined_call_operand.hbm [shape: f32[16,128], index: 5, kind: output, shape index: {}]  }
   0x1   :  { %11 = vsyncpa [#allocation6], 0 }
   0x2   :  { %12 = vsyncpa [#allocation4], 0 }
   0x3   :  { %14 = vsyncpa [#allocation4 + $0x1], 0  ;;  %s1010_s18 = smov 0   ;;  %s1012_s19 = smov 0  }
   0x4   :  { %s1014_s20 = smov 0   ;;  %s1016_s21 = smov 0  }
   0x5 LB: > { %s1031_s22 = sadd.s32 4294967295, %s970_s21   ;;  %s676_s23 = sadd.s32 4294967294, %s970_s21   ;;  %s970_s21 = sphi %s1016_s21, %s1163_s21   ;;  %s966_s20 = sphi %s1014_s20, %s1162_s20   ;;  %s962_s19 = sphi %s1012_s19, %s1161_s19   ;;  %s958_s18 = sphi %s1010_s18, %s1160_s18  }
   0x6   : > { %s1035_s24 = sadd.s32 1, %s970_s21   ;;  %s137_s25 = sadd.s32 1, %s966_s20 }
   0x7   : > { %s134_s26 = ssub.s32 %s970_s21, %s1035_s24  ;;  %p147_p0 = scmp.ne.s32.totalorder %s966_s20, %s962_s19 }
   0x8   : > { %p135_p1 = scmp.eq.s32.totalorder %s134_s26, 0  ;;  %p148_p2 = scmp.eq.s32.totalorder %s1031_s22, 1 }
   0x9   : > { %p153_p3 = scmp.ne.s32.totalorder %s962_s19, %s958_s18  ;;  %p154_p4 = scmp.eq.s32.totalorder %s676_s23, 1 }
   0xa   : > { %s1046_s27 = scalar_select %p135_p1, %s966_s20, %s137_s25  }
   0xb   : > { %p1048_p5 = por %p148_p2, %p147_p0  ;;  %p1052_p6 = por %p154_p4, %p153_p3 }
   0xc   : > { %p677_p7 = scmp.ge.s32.totalorder %s970_s21, 1  ;;  %p161_p8 = scmp.lt.s32.totalorder %s970_s21, 3 }
   0xd   : > { %s1152_s29 = scalar_select %p1052_p6, 1, 0 }
   0xe   : > { %p1150_p9 = scmp.eq.s32.totalorder %s1031_s22, 0  ;;  %p1059_p10 = pnand %p677_p7, %p161_p8 }
   0xf   : > { %s972_s6 = smov [#allocation2]   ;;  %s973_s9 = smov [#allocation5]  }
  0x10   : > { %s173_s7 = sshll.u32 %s972_s6, 4  ;;  %p755_p11 = pneg %p1059_p10  ;;  %s174_s7 = int_to_ptr.vmem [resolvable:$true] %s173_s7 }
  0x11   : > { %s189_s10 = sshll.u32 %s973_s9, 4  ;;  %s861_s11 = scalar_lea.vmem %s174_s7, 2048  ;;  %s190_s10 = int_to_ptr.vmem [resolvable:$true] %s189_s10 }
  0x12   : > { %p1067_p12 = pnand %p1150_p9, %p755_p11  ;;  %p862_p0 = scmp.ne.s32.totalorder %s174_s7, %s861_s11 }
  0x13   : > { %p869_p3 = scmp.lt.s32.totalorder %s174_s7, %s174_s7  ;;  %p870_p4 = scmp.lt.s32.totalorder %s861_s11, %s861_s11 }
  0x14   : > { %p852_p13 = pneg %p1067_p12 }
  0x15   : > { %p871_p7 = por %p870_p4, %p869_p3 }
  0x16   : > { %p864_p1 = pnand %p862_p0, %p852_p13 }
  0x18   : > { %p865_p2 = pneg %p864_p1 }
  0x1a   : > { %p872_p8 = pnand %p871_p7, %p865_p2 }
  0x1c   : > { %875 = shalt.err (!%p872_p8)
}
  0x1d   : > { %s974_s12 = smov 128   ;;  %s975_s13 = smov 8  }
  0x1e   : > { %758 = dma.hbm_to_vmem [thread:$0]  (!%p1067_p12), %s1145_s1, 2048, %s174_s7, [#allocation3], %s974_s12, %s974_s12, %s975_s13  }
  0x1f   : > { %s887_s16 = scalar_lea.vmem %s190_s10, 2048  ;;  %p895_p9 = scmp.lt.s32.totalorder %s190_s10, %s190_s10 }
  0x20   : > { %p888_p11 = scmp.ne.s32.totalorder %s190_s10, %s887_s16  ;;  %p896_p6 = scmp.lt.s32.totalorder %s887_s16, %s887_s16 }
  0x22   : > { %p890_p0 = pnand %p888_p11, %p852_p13  ;;  %p897_p3 = por %p896_p6, %p895_p9 }
  0x24   : > { %p891_p1 = pneg %p890_p0 }
  0x26   : > { %p898_p2 = pnand %p897_p3, %p891_p1 }
  0x28   : > { %901 = shalt.err (!%p898_p2)
}
  0x29   : > { %s976_s17 = smov 64   ;;  %s977_s23 = smov 4  }
  0x2a   : > { %761 = dma.hbm_to_vmem [thread:$0]  (!%p1067_p12), %s1147_s3, 2048, %s190_s10, [#allocation6], %s976_s17, %s976_s17, %s977_s23  }
  0x2b   : > { %215 = sbr.rel (%p1059_p10) target bundleno = 499 (0x1f3), region = 40  ;;  %p1155_p4 = scmp.eq.s32.totalorder (!%p1059_p10), %s1031_s22, 0 }
  0x30   : > { %945 = dma.done.wait (%p1155_p4), [#allocation3], 2048   ;;  %p1156_p13 = pmov %p1155_p4 }
  0x31   : > { %p1157_p6 = pmov %p1155_p4 }
  0x32   : > { %947 = vsyncadd (%p1156_p13), [#allocation3], 4294965248 }
  0x33   : > { %949 = dma.done.wait (%p1157_p6), [#allocation6], 2048   ;;  %p1158_p9 = pmov %p1155_p4 }
  0x34   : > { %v978_v0 = vmov 0   ;;  %v810_v1 = vld [vmem:[#allocation2 + $0x74] ss:$8 sps:$4 sm:$0xff]   ;;  %v812_v2 = vld [vmem:[#allocation2 + $0x70] ss:$8 sps:$4 sm:$0xff]   ;;  %p246_p10 = scmp.lt.s32.totalorder %s1031_s22, 1  ;;  %v271_v35 = vlaneseq }
  0x35   : > { %951 = vsyncadd (%p1158_p9), [#allocation6], 4294965248  ;;  %393 = vmatprep.mubr.bf16.mxu0 %v978_v0  ;;  %361 = vmatprep.subr.bf16.mxu0 %v810_v1  ;;  %v813_v3 = vld [vmem:[#allocation2 + $0x64] ss:$8 sps:$4 sm:$0xff]   ;;  %v815_v4 = vld [vmem:[#allocation2 + $0x60] ss:$8 sps:$4 sm:$0xff]  }
  0x36   : > { %362 = vmatpush1.bf16.msra.mxu0 %v812_v2  ;;  %v816_v5 = vld [vmem:[#allocation2 + $0x54] ss:$8 sps:$4 sm:$0xff]   ;;  %v818_v6 = vld [vmem:[#allocation2 + $0x50] ss:$8 sps:$4 sm:$0xff]   ;;  %v819_v7 = vld [vmem:[#allocation2 + $0x44] ss:$8 sps:$4 sm:$0xff]  }
  0x37   : > { %363 = vmatprep.subr.bf16.mxu0 %v813_v3  ;;  %v821_v8 = vld [vmem:[#allocation2 + $0x40] ss:$8 sps:$4 sm:$0xff]   ;;  %v822_v9 = vld [vmem:[#allocation2 + $0x34] ss:$8 sps:$4 sm:$0xff]   ;;  %v824_v12 = vld [vmem:[#allocation2 + $0x30] ss:$8 sps:$4 sm:$0xff]  }
  0x38   : > { %v834_v10 = vld [vmem:[#allocation5 + $0x78] sm:$0xff]   ;;  %v836_v13 = vld [vmem:[#allocation5 + $0x70] sm:$0xff]   ;;  %s247_s30 = scalar_select %p246_p10, %s1031_s22, 1  ;;  %v838_v15 = vld [vmem:[#allocation5 + $0x68] sm:$0xff]   ;;  %v272_v36 = vshrl.u32 %v271_v35, 7 }
  0x39   : > { %v835_v11 = vld [vmem:[#allocation5 + $0x38] sm:$0xff]   ;;  %723 = vmatprep.subr.bf16.mxu1 %v834_v10  ;;  %v837_v14 = vld [vmem:[#allocation5 + $0x30] sm:$0xff]   ;;  %v825_v16 = vld [vmem:[#allocation2 + $0x24] ss:$8 sps:$4 sm:$0xff]   ;;  %s243_s12 = sand.u32 1, %s962_s19   ;;  %s720_s16 = sshll.u32 %s1031_s22, 7 }
  0x3a   : > { %364 = vmatpush1.bf16.msra.mxu0 %v815_v4  ;;  %724 = vmatpush3.bf16.msra.mxu1 %v835_v11  ;;  %v827_v17 = vld [vmem:[#allocation2 + $0x20] ss:$8 sps:$4 sm:$0xff]   ;;  %s685_s6 = sshll.u32 %s247_s30, 3  ;;  %v828_v20 = vld [vmem:[#allocation2 + $0x14] ss:$8 sps:$4 sm:$0xff]   ;;  %v273_v37 = vsub.s32 0, %v272_v36  ;;  %s593_s30 = scalar_lea.hbm %s1149_s5, %s720_s16 }
  0x3b   : > { %365 = vmatprep.subr.bf16.mxu0 %v816_v5  ;;  %725 = vmatprep.subr.bf16.mxu1 %v836_v13  ;;  %v839_v18 = vld [vmem:[#allocation5 + $0x28] sm:$0xff]   ;;  %v840_v19 = vld [vmem:[#allocation5 + $0x60] sm:$0xff]   ;;  %v830_v21 = vld [vmem:[#allocation2 + $0x10] ss:$8 sps:$4 sm:$0xff]   ;;  %s249_s9 = scalar_lea.vmem %s1144_s0, %s685_s6  ;;  %v277_v39 = vsub.s32 1, %v272_v36  ;;  %s684_s13 = sshll.u32 %s243_s12, 3 }
  0x3c   : > { %v831_v22 = vld [vmem:[#allocation2 + $0x4] ss:$8 sps:$4 sm:$0xff]   ;;  %v842_v24 = vld [vmem:[#allocation5 + $0x58] sm:$0xff]   ;;  %v833_v26 = vld [vmem:[#allocation2] ss:$8 sps:$4 sm:$0xff]   ;;  %s245_s17 = scalar_lea.vmem [#allocation7], %s684_s13 }
  0x3d   : > { %v841_v23 = vld [vmem:[#allocation5 + $0x20] sm:$0xff]   ;;  %v843_v25 = vld [vmem:[#allocation5 + $0x18] sm:$0xff]   ;;  %v844_v28 = vld [vmem:[#allocation5 + $0x50] sm:$0xff]   ;;  %s595_s23 = sshll.u32 %s245_s17, 4  ;;  %s582_s6 = scalar_lea.sflag [#allocation4], %s243_s12  ;;  %s596_s23 = int_to_ptr.vmem [resolvable:$true] %s595_s23 }
  0x3e   : > { %366 = vmatpush1.bf16.msra.mxu0 %v818_v6  ;;  %726 = vmatpush3.bf16.msra.mxu1 %v837_v14  ;;  %v251_v27 = vld [vmem:[%s249_s9] sm:$0xff]  ;;  %v845_v30 = vld [vmem:[#allocation5 + $0x10] sm:$0xff]   ;;  %v846_v31 = vld [vmem:[#allocation5 + $0x48] sm:$0xff]   ;;  %s902_s7 = scalar_lea.vmem %s596_s23, 128  ;;  %s979_s8 = smov [#allocation7]  }
  0x3f   : > { %367 = vmatprep.subr.bf16.mxu0 %v819_v7  ;;  %727 = vmatprep.subr.bf16.mxu1 %v838_v15  ;;  %v252_v29 = vpack.c.bf16 %v251_v27, %v251_v27  ;;  %v847_v32 = vld [vmem:[#allocation5 + $0x8] sm:$0xff]   ;;  %v848_v33 = vld [vmem:[#allocation5 + $0x40] sm:$0xff]   ;;  %p903_p12 = scmp.ne.s32.totalorder %s596_s23, %s902_s7  ;;  %s906_s9 = sshll.u32 %s979_s8, 4  ;;  %s907_s9 = int_to_ptr.vmem [resolvable:$false] %s906_s9 }
  0x40   : > { %v849_v34 = vld [vmem:[#allocation5] sm:$0xff]   ;;  %s908_s22 = scalar_lea.vmem %s907_s9, 256  ;;  %p909_p11 = scmp.lt.s32.totalorder %s596_s23, %s907_s9 }
  0x41   : > { %v269_v38 = vld [vmem:[%s1146_s2] sm:$0x3]  ;;  %p904_p7 = pnand %p903_p12, %p1048_p5  ;;  %p910_p0 = scmp.lt.s32.totalorder %s908_s22, %s902_s7 }
  0x42   : > { %368 = vmatpush1.bf16.msra.mxu0 %v821_v8  ;;  %728 = vmatpush3.bf16.msra.mxu1 %v839_v18  ;;  %v274_v40 = vrot.slane %v269_v38, %v273_v37  ;;  %v278_v41 = vrot.slane %v269_v38, %v277_v39  ;;  %v702_v51 = vld [vmem:[%s1148_s4] ss:$0 sm:$0xff] }
  0x43   : > { %369 = vmatprep.subr.bf16.mxu0 %v822_v9  ;;  %729 = vmatprep.subr.bf16.mxu1 %v840_v19  ;;  %p905_p8 = pneg %p904_p7  ;;  %p911_p1 = por %p910_p0, %p909_p11 }
  0x45   : > { %p912_p3 = pnand %p911_p1, %p905_p8 }
  0x46   : > { %370 = vmatpush1.bf16.msra.mxu0 %v824_v12  ;;  %730 = vmatpush3.bf16.msra.mxu1 %v841_v23 }
  0x47   : > { %371 = vmatprep.subr.bf16.mxu0 %v825_v16  ;;  %731 = vmatprep.subr.bf16.mxu1 %v842_v24 }
  0x4a   : > { %372 = vmatpush1.bf16.msra.mxu0 %v827_v17  ;;  %732 = vmatpush3.bf16.msra.mxu1 %v843_v25 }
  0x4b   : > { %373 = vmatprep.subr.bf16.mxu0 %v828_v20  ;;  %733 = vmatprep.subr.bf16.mxu1 %v844_v28 }
  0x4e   : > { %374 = vmatpush1.bf16.msra.mxu0 %v830_v21  ;;  %734 = vmatpush3.bf16.msra.mxu1 %v845_v30 }
  0x4f   : > { %375 = vmatprep.subr.bf16.mxu0 %v831_v22  ;;  %735 = vmatprep.subr.bf16.mxu1 %v846_v31 }
  0x52   : > { %376 = vmatpush1.bf16.msra.mxu0 %v833_v26  ;;  %736 = vmatpush3.bf16.msra.mxu1 %v847_v32 }
  0x53   : > { %737 = vmatprep.subr.bf16.mxu1 %v848_v33 }
  0x55   : > { %394 = vmatmul.mubr.bf16.vlgmr.msra.gmra.mxu0 %v252_v29 }
  0x56   : > { %738 = vmatpush3.bf16.msra.mxu1 %v849_v34 }
 0x115   : > { %v395_v42 = vpop.f32.mrf.mxu0 }
 0x116   : > { %v396_v43 = vadd.f32 %v395_v42, %v274_v40 }
 0x117   : > { %v397_v44 = vpop.f32.mrf.mxu0 }
 0x118   : > { %v398_v45 = vadd.f32 %v397_v44, %v278_v41  ;;  %v402_v48 = vpack.c.bf16 %v396_v43, %v396_v43 }
 0x119   : > { %v399_v46 = vpop.f32.mrf.mxu0 }
 0x11a   : > { %v403_v47 = vpack.c.bf16 %v398_v45, %v398_v45 }
 0x11b   : > { %v400_v49 = vpop.f32.mrf.mxu0 }
 0x11c   : > { %571 = vmatprep.mubr.bf16.mxu1 %v403_v47 }
 0x11d   : > { %572 = vmatmul.mubr.bf16.vlgmr.msra.gmra.mxu1 %v402_v48 }
 0x1dd   : > { %v739_v50 = vpop.f32.mrf.mxu1 }
 0x1df   : > { %v740_v52 = vpop.f32.mrf.mxu1 }
 0x1e0   : > { %v741_v53 = vadd.f32 %v740_v52, %v739_v50 }
 0x1e1   : > { %v742_v54 = vpop.f32.mrf.mxu1 }
 0x1e2   : > { %v574_v55 = vadd.f32 %v741_v53, %v702_v51 }
 0x1e3   : > { %v743_v56 = vpop.f32.mrf.mxu1 }
 0x1e4   : > { %v579_v57 = vmax.f32 %v574_v55, 0.0 }
 0x1e6   : > { %580 = vst [vmem:[%s245_s17] sm:$0xff] %v579_v57 }
 0x1e7   : > { %915 = shalt.err (!%p912_p3)
}
 0x1e8   : > { %s916_s10 = scalar_lea.hbm %s593_s30, 128  ;;  %s920_s13 = scalar_lea.hbm %s1149_s5, 256 }
 0x1e9   : > { %p917_p2 = scmp.ne.s32.totalorder %s593_s30, %s916_s10  ;;  %p921_p6 = scmp.lt.s32.totalorder %s593_s30, %s1149_s5 }
 0x1ea   : > { %p922_p9 = scmp.lt.s32.totalorder %s920_s13, %s916_s10 }
 0x1eb   : > { %p918_p4 = pnand %p917_p2, %p1048_p5 }
 0x1ec   : > { %p923_p10 = por %p922_p9, %p921_p6 }
 0x1ed   : > { %p919_p13 = pneg %p918_p4 }
 0x1ef   : > { %p924_p12 = pnand %p923_p10, %p919_p13 }
 0x1f1   : > { %927 = shalt.err (!%p924_p12)
}
 0x1f2   : > { %753 = dma.vmem_to_hbm [thread:$0]  (%p1048_p5), %s596_s23, 128, %s593_s30, %s582_s6  }
 0x1f3 PF: > { %p770_p7 = scmp.ge.s32.totalorder %s970_s21, 2  ;;  %s607_s16 = sand.u32 1, %s958_s18  }
 0x1f4   : > { %p1159_p8 = scmp.ne.s32.totalorder %s1152_s29, 0  ;;  %s608_s17 = scalar_lea.sflag [#allocation4], %s607_s16 }
 0x1f6   : > { %p763_p11 = pnand %p770_p7, %p1159_p8 }
 0x1f8   : > { %p764_p0 = pneg %p763_p11 }
 0x1fa   : > { %953 = dma.done.wait (%p764_p0), %s608_s17, 128  }
 0x1fb   : > { %955 = vsyncadd (%p764_p0), %s608_s17, 4294967168  ;;  %p17_p1 = scmp.ge.s32.totalorder %s1035_s24, 4   ;;  %s1160_s18 = smov %s962_s19 }
 0x1fc   : > { %s1161_s19 = smov %s966_s20  ;;  %s1162_s20 = smov %s1046_s27 }
 0x1fd   : > { %s1163_s21 = smov %s1035_s24  ;;  %19 = sbr.rel (!%p17_p1) target bundleno = 5 (0x5), region = 84 }
 0x202   :  { %613 = vsyncpa [#allocation3], 1 }
 0x203   :  { %615 = vsyncpa [#allocation3 + $0x1], 1 }
 0x204   :  { %616 = vsyncpa [#allocation6], 1 }
 0x205   :  { %617 = vsyncpa [#allocation4], 1 }
 0x206   :  { %619 = vsyncpa [#allocation4 + $0x1], 1 }

// kernel: _chained_forward_impl.1
= control target key start
LH: loop header
LB: loop body
LE: loop exit
PB: predicated region body
PF: predicated region fallthrough
CT: control target
= control target key end

     0   :  { %10 = vsyncpa [#allocation3], 0  ;;  %s1144_s0 = inlined_call_operand.vmem [shape: f32[16,128], index: 0, kind: input, shape index: {}]   ;;  %s1145_s1 = inlined_call_operand.hbm [shape: bf16[128,256], index: 1, kind: input, shape index: {}]   ;;  %s1146_s2 = inlined_call_operand.vmem [shape: f32[1,256], index: 2, kind: input, shape index: {}]   ;;  %s1147_s3 = inlined_call_operand.hbm [shape: bf16[256,128], index: 3, kind: input, shape index: {}]   ;;  %s1148_s4 = inlined_call_operand.vmem [shape: f32[1,128], index: 4, kind: input, shape index: {}]   ;;  %s1149_s5 = inlined_call_operand.hbm [shape: f32[16,128], index: 5, kind: output, shape index: {}]  }
   0x1   :  { %11 = vsyncpa [#allocation6], 0 }
   0x2   :  { %12 = vsyncpa [#allocation4], 0 }
   0x3   :  { %14 = vsyncpa [#allocation4 + $0x1], 0  ;;  %s1010_s18 = smov 0   ;;  %s1012_s19 = smov 0  }
   0x4   :  { %s1014_s20 = smov 0   ;;  %s1016_s21 = smov 0  }
   0x5 LB: > { %s1031_s22 = sadd.s32 4294967295, %s970_s21   ;;  %s676_s23 = sadd.s32 4294967294, %s970_s21   ;;  %s970_s21 = sphi %s1016_s21, %s1163_s21   ;;  %s966_s20 = sphi %s1014_s20, %s1162_s20   ;;  %s962_s19 = sphi %s1012_s19, %s1161_s19   ;;  %s958_s18 = sphi %s1010_s18, %s1160_s18  }
   0x6   : > { %s1035_s24 = sadd.s32 1, %s970_s21   ;;  %s137_s25 = sadd.s32 1, %s966_s20 }
   0x7   : > { %s134_s26 = ssub.s32 %s970_s21, %s1035_s24  ;;  %p147_p0 = scmp.ne.s32.totalorder %s966_s20, %s962_s19 }
   0x8   : > { %p135_p1 = scmp.eq.s32.totalorder %s134_s26, 0  ;;  %p148_p2 = scmp.eq.s32.totalorder %s1031_s22, 1 }
   0x9   : > { %p153_p3 = scmp.ne.s32.totalorder %s962_s19, %s958_s18  ;;  %p154_p4 = scmp.eq.s32.totalorder %s676_s23, 1 }
   0xa   : > { %s1046_s27 = scalar_select %p135_p1, %s966_s20, %s137_s25  }
   0xb   : > { %p1048_p5 = por %p148_p2, %p147_p0  ;;  %p1052_p6 = por %p154_p4, %p153_p3 }
   0xc   : > { %p677_p7 = scmp.ge.s32.totalorder %s970_s21, 1  ;;  %p161_p8 = scmp.lt.s32.totalorder %s970_s21, 3 }
   0xd   : > { %s1152_s29 = scalar_select %p1052_p6, 1, 0 }
   0xe   : > { %p1150_p9 = scmp.eq.s32.totalorder %s1031_s22, 0  ;;  %p1059_p10 = pnand %p677_p7, %p161_p8 }
   0xf   : > { %s972_s6 = smov [#allocation2]   ;;  %s973_s9 = smov [#allocation5]  }
  0x10   : > { %s173_s7 = sshll.u32 %s972_s6, 4  ;;  %p755_p11 = pneg %p1059_p10  ;;  %s174_s7 = int_to_ptr.vmem [resolvable:$true] %s173_s7 }
  0x11   : > { %s189_s10 = sshll.u32 %s973_s9, 4  ;;  %s861_s11 = scalar_lea.vmem %s174_s7, 2048  ;;  %s190_s10 = int_to_ptr.vmem [resolvable:$true] %s189_s10 }
  0x12   : > { %p1067_p12 = pnand %p1150_p9, %p755_p11  ;;  %p862_p0 = scmp.ne.s32.totalorder %s174_s7, %s861_s11 }
  0x13   : > { %p869_p3 = scmp.lt.s32.totalorder %s174_s7, %s174_s7  ;;  %p870_p4 = scmp.lt.s32.totalorder %s861_s11, %s861_s11 }
  0x14   : > { %p852_p13 = pneg %p1067_p12 }
  0x15   : > { %p871_p7 = por %p870_p4, %p869_p3 }
  0x16   : > { %p864_p1 = pnand %p862_p0, %p852_p13 }
  0x18   : > { %p865_p2 = pneg %p864_p1 }
  0x1a   : > { %p872_p8 = pnand %p871_p7, %p865_p2 }
  0x1c   : > { %875 = shalt.err (!%p872_p8)
}
  0x1d   : > { %s974_s12 = smov 128   ;;  %s975_s13 = smov 8  }
  0x1e   : > { %758 = dma.hbm_to_vmem [thread:$0]  (!%p1067_p12), %s1145_s1, 2048, %s174_s7, [#allocation3], %s974_s12, %s974_s12, %s975_s13  }
  0x1f   : > { %s887_s16 = scalar_lea.vmem %s190_s10, 2048  ;;  %p895_p9 = scmp.lt.s32.totalorder %s190_s10, %s190_s10 }
  0x20   : > { %p888_p11 = scmp.ne.s32.totalorder %s190_s10, %s887_s16  ;;  %p896_p6 = scmp.lt.s32.totalorder %s887_s16, %s887_s16 }
  0x22   : > { %p890_p0 = pnand %p888_p11, %p852_p13  ;;  %p897_p3 = por %p896_p6, %p895_p9 }
  0x24   : > { %p891_p1 = pneg %p890_p0 }
  0x26   : > { %p898_p2 = pnand %p897_p3, %p891_p1 }
  0x28   : > { %901 = shalt.err (!%p898_p2)
}
  0x29   : > { %s976_s17 = smov 64   ;;  %s977_s23 = smov 4  }
  0x2a   : > { %761 = dma.hbm_to_vmem [thread:$0]  (!%p1067_p12), %s1147_s3, 2048, %s190_s10, [#allocation6], %s976_s17, %s976_s17, %s977_s23  }
  0x2b   : > { %215 = sbr.rel (%p1059_p10) target bundleno = 499 (0x1f3), region = 40  ;;  %p1155_p4 = scmp.eq.s32.totalorder (!%p1059_p10), %s1031_s22, 0 }
  0x30   : > { %945 = dma.done.wait (%p1155_p4), [#allocation3], 2048   ;;  %p1156_p13 = pmov %p1155_p4 }
  0x31   : > { %p1157_p6 = pmov %p1155_p4 }
  0x32   : > { %947 = vsyncadd (%p1156_p13), [#allocation3], 4294965248 }
  0x33   : > { %949 = dma.done.wait (%p1157_p6), [#allocation6], 2048   ;;  %p1158_p9 = pmov %p1155_p4 }
  0x34   : > { %v978_v0 = vmov 0   ;;  %v810_v1 = vld [vmem:[#allocation2 + $0x74] ss:$8 sps:$4 sm:$0xff]   ;;  %v812_v2 = vld [vmem:[#allocation2 + $0x70] ss:$8 sps:$4 sm:$0xff]   ;;  %p246_p10 = scmp.lt.s32.totalorder %s1031_s22, 1  ;;  %v271_v35 = vlaneseq }
  0x35   : > { %951 = vsyncadd (%p1158_p9), [#allocation6], 4294965248  ;;  %393 = vmatprep.mubr.bf16.mxu0 %v978_v0  ;;  %361 = vmatprep.subr.bf16.mxu0 %v810_v1  ;;  %v813_v3 = vld [vmem:[#allocation2 + $0x64] ss:$8 sps:$4 sm:$0xff]   ;;  %v815_v4 = vld [vmem:[#allocation2 + $0x60] ss:$8 sps:$4 sm:$0xff]  }
  0x36   : > { %362 = vmatpush1.bf16.msra.mxu0 %v812_v2  ;;  %v816_v5 = vld [vmem:[#allocation2 + $0x54] ss:$8 sps:$4 sm:$0xff]   ;;  %v818_v6 = vld [vmem:[#allocation2 + $0x50] ss:$8 sps:$4 sm:$0xff]   ;;  %v819_v7 = vld [vmem:[#allocation2 + $0x44] ss:$8 sps:$4 sm:$0xff]  }
  0x37   : > { %363 = vmatprep.subr.bf16.mxu0 %v813_v3  ;;  %v821_v8 = vld [vmem:[#allocation2 + $0x40] ss:$8 sps:$4 sm:$0xff]   ;;  %v822_v9 = vld [vmem:[#allocation2 + $0x34] ss:$8 sps:$4 sm:$0xff]   ;;  %v824_v12 = vld [vmem:[#allocation2 + $0x30] ss:$8 sps:$4 sm:$0xff]  }
  0x38   : > { %v834_v10 = vld [vmem:[#allocation5 + $0x78] sm:$0xff]   ;;  %v836_v13 = vld [vmem:[#allocation5 + $0x70] sm:$0xff]   ;;  %s247_s30 = scalar_select %p246_p10, %s1031_s22, 1  ;;  %v838_v15 = vld [vmem:[#allocation5 + $0x68] sm:$0xff]   ;;  %v272_v36 = vshrl.u32 %v271_v35, 7 }
  0x39   : > { %v835_v11 = vld [vmem:[#allocation5 + $0x38] sm:$0xff]   ;;  %723 = vmatprep.subr.bf16.mxu1 %v834_v10  ;;  %v837_v14 = vld [vmem:[#allocation5 + $0x30] sm:$0xff]   ;;  %v825_v16 = vld [vmem:[#allocation2 + $0x24] ss:$8 sps:$4 sm:$0xff]   ;;  %s243_s12 = sand.u32 1, %s962_s19   ;;  %s720_s16 = sshll.u32 %s1031_s22, 7 }
  0x3a   : > { %364 = vmatpush1.bf16.msra.mxu0 %v815_v4  ;;  %724 = vmatpush3.bf16.msra.mxu1 %v835_v11  ;;  %v827_v17 = vld [vmem:[#allocation2 + $0x20] ss:$8 sps:$4 sm:$0xff]   ;;  %s685_s6 = sshll.u32 %s247_s30, 3  ;;  %v828_v20 = vld [vmem:[#allocation2 + $0x14] ss:$8 sps:$4 sm:$0xff]   ;;  %v273_v37 = vsub.s32 0, %v272_v36  ;;  %s593_s30 = scalar_lea.hbm %s1149_s5, %s720_s16 }
  0x3b   : > { %365 = vmatprep.subr.bf16.mxu0 %v816_v5  ;;  %725 = vmatprep.subr.bf16.mxu1 %v836_v13  ;;  %v839_v18 = vld [vmem:[#allocation5 + $0x28] sm:$0xff]   ;;  %v840_v19 = vld [vmem:[#allocation5 + $0x60] sm:$0xff]   ;;  %v830_v21 = vld [vmem:[#allocation2 + $0x10] ss:$8 sps:$4 sm:$0xff]   ;;  %s249_s9 = scalar_lea.vmem %s1144_s0, %s685_s6  ;;  %v277_v39 = vsub.s32 1, %v272_v36  ;;  %s684_s13 = sshll.u32 %s243_s12, 3 }
  0x3c   : > { %v831_v22 = vld [vmem:[#allocation2 + $0x4] ss:$8 sps:$4 sm:$0xff]   ;;  %v842_v24 = vld [vmem:[#allocation5 + $0x58] sm:$0xff]   ;;  %v833_v26 = vld [vmem:[#allocation2] ss:$8 sps:$4 sm:$0xff]   ;;  %s245_s17 = scalar_lea.vmem [#allocation7], %s684_s13 }
  0x3d   : > { %v841_v23 = vld [vmem:[#allocation5 + $0x20] sm:$0xff]   ;;  %v843_v25 = vld [vmem:[#allocation5 + $0x18] sm:$0xff]   ;;  %v844_v28 = vld [vmem:[#allocation5 + $0x50] sm:$0xff]   ;;  %s595_s23 = sshll.u32 %s245_s17, 4  ;;  %s582_s6 = scalar_lea.sflag [#allocation4], %s243_s12  ;;  %s596_s23 = int_to_ptr.vmem [resolvable:$true] %s595_s23 }
  0x3e   : > { %366 = vmatpush1.bf16.msra.mxu0 %v818_v6  ;;  %726 = vmatpush3.bf16.msra.mxu1 %v837_v14  ;;  %v251_v27 = vld [vmem:[%s249_s9] sm:$0xff]  ;;  %v845_v30 = vld [vmem:[#allocation5 + $0x10] sm:$0xff]   ;;  %v846_v31 = vld [vmem:[#allocation5 + $0x48] sm:$0xff]   ;;  %s902_s7 = scalar_lea.vmem %s596_s23, 128  ;;  %s979_s8 = smov [#allocation7]  }
  0x3f   : > { %367 = vmatprep.subr.bf16.mxu0 %v819_v7  ;;  %727 = vmatprep.subr.bf16.mxu1 %v838_v15  ;;  %v252_v29 = vpack.c.bf16 %v251_v27, %v251_v27  ;;  %v847_v32 = vld [vmem:[#allocation5 + $0x8] sm:$0xff]   ;;  %v848_v33 = vld [vmem:[#allocation5 + $0x40] sm:$0xff]   ;;  %p903_p12 = scmp.ne.s32.totalorder %s596_s23, %s902_s7  ;;  %s906_s9 = sshll.u32 %s979_s8, 4  ;;  %s907_s9 = int_to_ptr.vmem [resolvable:$false] %s906_s9 }
  0x40   : > { %v849_v34 = vld [vmem:[#allocation5] sm:$0xff]   ;;  %s908_s22 = scalar_lea.vmem %s907_s9, 256  ;;  %p909_p11 = scmp.lt.s32.totalorder %s596_s23, %s907_s9 }
  0x41   : > { %v269_v38 = vld [vmem:[%s1146_s2] sm:$0x3]  ;;  %p904_p7 = pnand %p903_p12, %p1048_p5  ;;  %p910_p0 = scmp.lt.s32.totalorder %s908_s22, %s902_s7 }
  0x42   : > { %368 = vmatpush1.bf16.msra.mxu0 %v821_v8  ;;  %728 = vmatpush3.bf16.msra.mxu1 %v839_v18  ;;  %v274_v40 = vrot.slane %v269_v38, %v273_v37  ;;  %v278_v41 = vrot.slane %v269_v38, %v277_v39  ;;  %v702_v51 = vld [vmem:[%s1148_s4] ss:$0 sm:$0xff] }
  0x43   : > { %369 = vmatprep.subr.bf16.mxu0 %v822_v9  ;;  %729 = vmatprep.subr.bf16.mxu1 %v840_v19  ;;  %p905_p8 = pneg %p904_p7  ;;  %p911_p1 = por %p910_p0, %p909_p11 }
  0x45   : > { %p912_p3 = pnand %p911_p1, %p905_p8 }
  0x46   : > { %370 = vmatpush1.bf16.msra.mxu0 %v824_v12  ;;  %730 = vmatpush3.bf16.msra.mxu1 %v841_v23 }
  0x47   : > { %371 = vmatprep.subr.bf16.mxu0 %v825_v16  ;;  %731 = vmatprep.subr.bf16.mxu1 %v842_v24 }
  0x4a   : > { %372 = vmatpush1.bf16.msra.mxu0 %v827_v17  ;;  %732 = vmatpush3.bf16.msra.mxu1 %v843_v25 }
  0x4b   : > { %373 = vmatprep.subr.bf16.mxu0 %v828_v20  ;;  %733 = vmatprep.subr.bf16.mxu1 %v844_v28 }
  0x4e   : > { %374 = vmatpush1.bf16.msra.mxu0 %v830_v21  ;;  %734 = vmatpush3.bf16.msra.mxu1 %v845_v30 }
  0x4f   : > { %375 = vmatprep.subr.bf16.mxu0 %v831_v22  ;;  %735 = vmatprep.subr.bf16.mxu1 %v846_v31 }
  0x52   : > { %376 = vmatpush1.bf16.msra.mxu0 %v833_v26  ;;  %736 = vmatpush3.bf16.msra.mxu1 %v847_v32 }
  0x53   : > { %737 = vmatprep.subr.bf16.mxu1 %v848_v33 }
  0x55   : > { %394 = vmatmul.mubr.bf16.vlgmr.msra.gmra.mxu0 %v252_v29 }
  0x56   : > { %738 = vmatpush3.bf16.msra.mxu1 %v849_v34 }
 0x115   : > { %v395_v42 = vpop.f32.mrf.mxu0 }
 0x116   : > { %v396_v43 = vadd.f32 %v395_v42, %v274_v40 }
 0x117   : > { %v397_v44 = vpop.f32.mrf.mxu0 }
 0x118   : > { %v398_v45 = vadd.f32 %v397_v44, %v278_v41  ;;  %v402_v48 = vpack.c.bf16 %v396_v43, %v396_v43 }
 0x119   : > { %v399_v46 = vpop.f32.mrf.mxu0 }
 0x11a   : > { %v403_v47 = vpack.c.bf16 %v398_v45, %v398_v45 }
 0x11b   : > { %v400_v49 = vpop.f32.mrf.mxu0 }
 0x11c   : > { %571 = vmatprep.mubr.bf16.mxu1 %v403_v47 }
 0x11d   : > { %572 = vmatmul.mubr.bf16.vlgmr.msra.gmra.mxu1 %v402_v48 }
 0x1dd   : > { %v739_v50 = vpop.f32.mrf.mxu1 }
 0x1df   : > { %v740_v52 = vpop.f32.mrf.mxu1 }
 0x1e0   : > { %v741_v53 = vadd.f32 %v740_v52, %v739_v50 }
 0x1e1   : > { %v742_v54 = vpop.f32.mrf.mxu1 }
 0x1e2   : > { %v574_v55 = vadd.f32 %v741_v53, %v702_v51 }
 0x1e3   : > { %v743_v56 = vpop.f32.mrf.mxu1 }
 0x1e4   : > { %v579_v57 = vmax.f32 %v574_v55, 0.0 }
 0x1e6   : > { %580 = vst [vmem:[%s245_s17] sm:$0xff] %v579_v57 }
 0x1e7   : > { %915 = shalt.err (!%p912_p3)
}
 0x1e8   : > { %s916_s10 = scalar_lea.hbm %s593_s30, 128  ;;  %s920_s13 = scalar_lea.hbm %s1149_s5, 256 }
 0x1e9   : > { %p917_p2 = scmp.ne.s32.totalorder %s593_s30, %s916_s10  ;;  %p921_p6 = scmp.lt.s32.totalorder %s593_s30, %s1149_s5 }
 0x1ea   : > { %p922_p9 = scmp.lt.s32.totalorder %s920_s13, %s916_s10 }
 0x1eb   : > { %p918_p4 = pnand %p917_p2, %p1048_p5 }
 0x1ec   : > { %p923_p10 = por %p922_p9, %p921_p6 }
 0x1ed   : > { %p919_p13 = pneg %p918_p4 }
 0x1ef   : > { %p924_p12 = pnand %p923_p10, %p919_p13 }
 0x1f1   : > { %927 = shalt.err (!%p924_p12)
}
 0x1f2   : > { %753 = dma.vmem_to_hbm [thread:$0]  (%p1048_p5), %s596_s23, 128, %s593_s30, %s582_s6  }
 0x1f3 PF: > { %p770_p7 = scmp.ge.s32.totalorder %s970_s21, 2  ;;  %s607_s16 = sand.u32 1, %s958_s18  }
 0x1f4   : > { %p1159_p8 = scmp.ne.s32.totalorder %s1152_s29, 0  ;;  %s608_s17 = scalar_lea.sflag [#allocation4], %s607_s16 }
 0x1f6   : > { %p763_p11 = pnand %p770_p7, %p1159_p8 }
 0x1f8   : > { %p764_p0 = pneg %p763_p11 }
 0x1fa   : > { %953 = dma.done.wait (%p764_p0), %s608_s17, 128  }
 0x1fb   : > { %955 = vsyncadd (%p764_p0), %s608_s17, 4294967168  ;;  %p17_p1 = scmp.ge.s32.totalorder %s1035_s24, 4   ;;  %s1160_s18 = smov %s962_s19 }
 0x1fc   : > { %s1161_s19 = smov %s966_s20  ;;  %s1162_s20 = smov %s1046_s27 }
 0x1fd   : > { %s1163_s21 = smov %s1035_s24  ;;  %19 = sbr.rel (!%p17_p1) target bundleno = 5 (0x5), region = 84 }
 0x202   :  { %613 = vsyncpa [#allocation3], 1 }
 0x203   :  { %615 = vsyncpa [#allocation3 + $0x1], 1 }
 0x204   :  { %616 = vsyncpa [#allocation6], 1 }
 0x205   :  { %617 = vsyncpa [#allocation4], 1 }
 0x206   :  { %619 = vsyncpa [#allocation4 + $0x1], 1 }

</bundles_post_ra>
